<compile_context>
chip_gen: v6e
topology: v6e:2x2x1
jax: 0.10.0
libtpu: 0.0.40
codegen_flags: <defaults>
</compile_context>

<pallas_src>
import functools

import jax
import jax.numpy as jnp
from jax import lax
from jax.experimental import pallas as pl
from jax.experimental.pallas import tpu as pltpu


def _mapping_resblock_kernel(mask_ref, w1_ref, b1_ref, w2_ref, b2_ref,
                             x_ref, out_ref, *, W, HW, NBC):
    """Processes NB images (NBC = NB*C sublane rows) per grid step.

    x_ref / out_ref : (NBC, HW)      image-channel rows on sublanes, flattened
                                     spatial axis on lanes (lane-dense).
    mask_ref        : (9, NBC, HW)   f32 0/1 per-tap spatial validity (resident).
    w*_ref          : (NBC, 9*NBC)   block-diag-over-batch im2col weights
                                     (conv2 weights pre-scaled by 0.1).
    b*_ref          : (NBC, HW)      per-row bias slabs (b2 pre-scaled by 0.1).
    """
    x = x_ref[...]                                            # (NBC, HW)

    def tap_matrix(slab):
        # One lane-roll (XLU) + one mask multiply (VPU) per tap covers ALL
        # channels/images in the slab; stack 9 taps -> (9*NBC, HW).
        cols = []
        for dy in range(3):
            for dx in range(3):
                k = dy * 3 + dx
                off = (dy - 1) * W + (dx - 1)
                t = slab if off == 0 else pltpu.roll(slab, shift=(-off) % HW,
                                                     axis=1)
                if k != 4:                                    # centre tap valid
                    t = t * mask_ref[k]                       # (NBC, HW) mask
                cols.append(t)
        return jnp.concatenate(cols, axis=0)                  # (9*NBC, HW)

    # conv1: im2col matmul on the MXU + bias.
    h = jnp.dot(w1_ref[...], tap_matrix(x),
                preferred_element_type=jnp.float32,
                precision=lax.Precision.HIGHEST) + b1_ref[...]
    # LeakyReLU(0.2): max replaces cmp+select.
    h = jnp.maximum(h, 0.2 * h)
    # conv2 (weights/bias already scaled by 0.1) + residual.
    out_ref[...] = (jnp.dot(w2_ref[...], tap_matrix(h),
                            preferred_element_type=jnp.float32,
                            precision=lax.Precision.HIGHEST)
                    + b2_ref[...] + x)


def mapping_resblock(x_nchw, w1, b1, w2, b2, *, images_per_block=2):
    """x_nchw: (N, C, H, W) f32.  w*: (C, C, 3, 3) OIHW.  b*: (C,)."""
    N, C, H, W = x_nchw.shape
    HW = H * W
    f32 = jnp.float32

    NB = min(images_per_block, N)
    n_pad = (-N) % NB                       # tail padding if N % NB != 0
    x = x_nchw.astype(f32)
    if n_pad:
        x = jnp.concatenate([x, jnp.zeros((n_pad, C, H, W), f32)], axis=0)
    NP = N + n_pad
    NBC = NB * C
    # Free contiguous reshape: row = image*C + channel, lanes = H*W.
    x2d = x.reshape(NP * C, HW)

    # Per-tap spatial validity masks, precomputed once (no per-step iota / %).
    p = jnp.arange(HW, dtype=jnp.int32)
    py, px = p // W, p % W
    rows = []
    for dy in range(3):
        for dx in range(3):
            ny, nx = py + (dy - 1), px + (dx - 1)
            rows.append(((ny >= 0) & (ny < H) & (nx >= 0) & (nx < W)).astype(f32))
    mask = jnp.broadcast_to(jnp.stack(rows, 0)[:, None, :], (9, NBC, HW))

    # im2col weights, block-diagonal over the NB images packed per block.
    # Tap-matrix row order is k*NBC + b*C + ci -> column order of W_big.
    def build_wbig(w, scale):
        wt = (w.astype(f32) * scale).reshape(C, C, 9)             # [co, ci, k]
        eye = jnp.eye(NB, dtype=f32)
        blocks = [jnp.kron(eye, wt[:, :, k]) for k in range(9)]   # (NBC, NBC)
        return jnp.concatenate(blocks, axis=1)                    # (NBC, 9*NBC)

    w1b = build_wbig(w1, 1.0)
    w2b = build_wbig(w2, 0.1)                 # fold the 0.1 residual scale
    b1s = jnp.broadcast_to(jnp.tile(b1.astype(f32), NB)[:, None], (NBC, HW))
    b2s = jnp.broadcast_to((0.1 * jnp.tile(b2.astype(f32), NB))[:, None],
                           (NBC, HW))

    grid_steps = NP // NB
    kernel = functools.partial(_mapping_resblock_kernel, W=W, HW=HW, NBC=NBC)

    out2d = pl.pallas_call(
        kernel,
        out_shape=jax.ShapeDtypeStruct((NP * C, HW), f32),
        grid=(grid_steps,),
        in_specs=[
            pl.BlockSpec((9, NBC, HW), lambda n: (0, 0, 0)),   # masks (resident)
            pl.BlockSpec((NBC, 9 * NBC), lambda n: (0, 0)),    # W1 im2col
            pl.BlockSpec((NBC, HW), lambda n: (0, 0)),         # b1 slab
            pl.BlockSpec((NBC, 9 * NBC), lambda n: (0, 0)),    # 0.1*W2 im2col
            pl.BlockSpec((NBC, HW), lambda n: (0, 0)),         # 0.1*b2 slab
            pl.BlockSpec((NBC, HW), lambda n: (n, 0)),         # x block
        ],
        out_specs=pl.BlockSpec((NBC, HW), lambda n: (n, 0)),
        compiler_params=pltpu.CompilerParams(
            # Only split across TensorCores when there is >1 real step.
            dimension_semantics=("parallel",) if grid_steps > 1 else ("arbitrary",),
        ),
    )(mask, w1b, b1s, w2b, b2s, x2d)

    return out2d.reshape(NP, C, H, W)[:N]


def _reference(x, w1, b1, w2, b2):
    """Pure-JAX reference (same semantics as the PyTorch forward, padding=1)."""
    dn = ('NCHW', 'OIHW', 'NCHW')

    def conv(h, w, b):
        y = lax.conv_general_dilated(h, w, window_strides=(1, 1),
                                     padding=((1, 1), (1, 1)),
                                     dimension_numbers=dn,
                                     precision=lax.Precision.HIGHEST)
        return y + b.reshape(1, -1, 1, 1)

    h = conv(x, w1, b1)
    h = jnp.where(h > 0, h, 0.2 * h)
    h = conv(h, w2, b2)
    return 0.1 * h + x


if __name__ == "__main__":
    N, C, H, W = 2, 4, 16, 16
    key = jax.random.PRNGKey(0)
    kx, k1, k2, kb1, kb2 = jax.random.split(key, 5)

    x = jax.random.normal(kx, (N, C, H, W), jnp.float32)
    fan_in = C * 3 * 3
    # Conv weights in PyTorch OIHW layout, deterministic fan-in scaled init.
    w1 = jax.random.normal(k1, (C, C, 3, 3), jnp.float32) / jnp.sqrt(fan_in)
    w2 = jax.random.normal(k2, (C, C, 3, 3), jnp.float32) / jnp.sqrt(fan_in)
    b1 = 0.01 * jax.random.normal(kb1, (C,), jnp.float32)
    b2 = 0.01 * jax.random.normal(kb2, (C,), jnp.float32)

    out = jax.block_until_ready(mapping_resblock(x, w1, b1, w2, b2))
    ref = jax.block_until_ready(_reference(x, w1, b1, w2, b2))

    assert out.shape == (N, C, H, W)
    err = float(jnp.max(jnp.abs(out - ref)))
    assert err < 1e-3, f"max abs err {err}"
    print("KERNEL_OK")
</pallas_src>

<mosaic_0001>
module attributes {stable_mosaic.version = 11 : i64} {
  func.func @_mapping_resblock_kernel(%arg0: i32, %arg1: memref<9x8x256xf32, #tpu.memory_space<vmem>>, %arg2: memref<8x72xf32, #tpu.memory_space<vmem>>, %arg3: memref<8x256xf32, #tpu.memory_space<vmem>>, %arg4: memref<8x72xf32, #tpu.memory_space<vmem>>, %arg5: memref<8x256xf32, #tpu.memory_space<vmem>>, %arg6: memref<8x256xf32, #tpu.memory_space<vmem>>, %arg7: memref<8x256xf32, #tpu.memory_space<vmem>>) attributes {dimension_semantics = [#tpu.dimension_semantics<arbitrary>], iteration_bounds = array<i64: 1>, scalar_prefetch = 0 : i64, scratch_operands = 0 : i64, tpu.core_type = #tpu.core_type<tc>, window_params = [{pipeline_mode = #tpu.pipeline_mode<synchronous>, transform_indices = @transform_0, window_bounds = array<i64: 9, 8, 256>}, {pipeline_mode = #tpu.pipeline_mode<synchronous>, transform_indices = @transform_1, window_bounds = array<i64: 8, 72>}, {pipeline_mode = #tpu.pipeline_mode<synchronous>, transform_indices = @transform_2, window_bounds = array<i64: 8, 256>}, {pipeline_mode = #tpu.pipeline_mode<synchronous>, transform_indices = @transform_3, window_bounds = array<i64: 8, 72>}, {pipeline_mode = #tpu.pipeline_mode<synchronous>, transform_indices = @transform_4, window_bounds = array<i64: 8, 256>}, {transform_indices = @transform_5, window_bounds = array<i64: 8, 256>}, {transform_indices = @transform_6, window_bounds = array<i64: 8, 256>}]} {
    %c0 = arith.constant 0 : index
    %c0_0 = arith.constant 0 : index
    %0 = vector.load %arg6[%c0, %c0_0] : memref<8x256xf32, #tpu.memory_space<vmem>>, vector<8x256xf32>
    %c0_1 = arith.constant 0 : index
    %c0_2 = arith.constant 0 : index
    %1 = vector.load %arg2[%c0_1, %c0_2] : memref<8x72xf32, #tpu.memory_space<vmem>>, vector<8x72xf32>
    %c17_i32 = arith.constant 17 : i32
    %2 = tpu.dynamic_rotate %0 by %c17_i32 dim 1 : vector<8x256xf32>, i32 -> vector<8x256xf32>
    %c0_3 = arith.constant 0 : index
    %c0_4 = arith.constant 0 : index
    %c0_5 = arith.constant 0 : index
    %3 = vector.load %arg1[%c0_3, %c0_4, %c0_5] : memref<9x8x256xf32, #tpu.memory_space<vmem>>, vector<1x8x256xf32>
    %4 = vector.shape_cast %3 : vector<1x8x256xf32> to vector<8x256xf32>
    %5 = arith.mulf %2, %4 : vector<8x256xf32>
    %c16_i32 = arith.constant 16 : i32
    %6 = tpu.dynamic_rotate %0 by %c16_i32 dim 1 : vector<8x256xf32>, i32 -> vector<8x256xf32>
    %c1 = arith.constant 1 : index
    %c0_6 = arith.constant 0 : index
    %c0_7 = arith.constant 0 : index
    %7 = vector.load %arg1[%c1, %c0_6, %c0_7] : memref<9x8x256xf32, #tpu.memory_space<vmem>>, vector<1x8x256xf32>
    %8 = vector.shape_cast %7 : vector<1x8x256xf32> to vector<8x256xf32>
    %9 = arith.mulf %6, %8 : vector<8x256xf32>
    %c15_i32 = arith.constant 15 : i32
    %10 = tpu.dynamic_rotate %0 by %c15_i32 dim 1 : vector<8x256xf32>, i32 -> vector<8x256xf32>
    %c2 = arith.constant 2 : index
    %c0_8 = arith.constant 0 : index
    %c0_9 = arith.constant 0 : index
    %11 = vector.load %arg1[%c2, %c0_8, %c0_9] : memref<9x8x256xf32, #tpu.memory_space<vmem>>, vector<1x8x256xf32>
    %12 = vector.shape_cast %11 : vector<1x8x256xf32> to vector<8x256xf32>
    %13 = arith.mulf %10, %12 : vector<8x256xf32>
    %c1_i32 = arith.constant 1 : i32
    %14 = tpu.dynamic_rotate %0 by %c1_i32 dim 1 : vector<8x256xf32>, i32 -> vector<8x256xf32>
    %c3 = arith.constant 3 : index
    %c0_10 = arith.constant 0 : index
    %c0_11 = arith.constant 0 : index
    %15 = vector.load %arg1[%c3, %c0_10, %c0_11] : memref<9x8x256xf32, #tpu.memory_space<vmem>>, vector<1x8x256xf32>
    %16 = vector.shape_cast %15 : vector<1x8x256xf32> to vector<8x256xf32>
    %17 = arith.mulf %14, %16 : vector<8x256xf32>
    %c255_i32 = arith.constant 255 : i32
    %18 = tpu.dynamic_rotate %0 by %c255_i32 dim 1 : vector<8x256xf32>, i32 -> vector<8x256xf32>
    %c5 = arith.constant 5 : index
    %c0_12 = arith.constant 0 : index
    %c0_13 = arith.constant 0 : index
    %19 = vector.load %arg1[%c5, %c0_12, %c0_13] : memref<9x8x256xf32, #tpu.memory_space<vmem>>, vector<1x8x256xf32>
    %20 = vector.shape_cast %19 : vector<1x8x256xf32> to vector<8x256xf32>
    %21 = arith.mulf %18, %20 : vector<8x256xf32>
    %c241_i32 = arith.constant 241 : i32
    %22 = tpu.dynamic_rotate %0 by %c241_i32 dim 1 : vector<8x256xf32>, i32 -> vector<8x256xf32>
    %c6 = arith.constant 6 : index
    %c0_14 = arith.constant 0 : index
    %c0_15 = arith.constant 0 : index
    %23 = vector.load %arg1[%c6, %c0_14, %c0_15] : memref<9x8x256xf32, #tpu.memory_space<vmem>>, vector<1x8x256xf32>
    %24 = vector.shape_cast %23 : vector<1x8x256xf32> to vector<8x256xf32>
    %25 = arith.mulf %22, %24 : vector<8x256xf32>
    %c240_i32 = arith.constant 240 : i32
    %26 = tpu.dynamic_rotate %0 by %c240_i32 dim 1 : vector<8x256xf32>, i32 -> vector<8x256xf32>
    %c7 = arith.constant 7 : index
    %c0_16 = arith.constant 0 : index
    %c0_17 = arith.constant 0 : index
    %27 = vector.load %arg1[%c7, %c0_16, %c0_17] : memref<9x8x256xf32, #tpu.memory_space<vmem>>, vector<1x8x256xf32>
    %28 = vector.shape_cast %27 : vector<1x8x256xf32> to vector<8x256xf32>
    %29 = arith.mulf %26, %28 : vector<8x256xf32>
    %c239_i32 = arith.constant 239 : i32
    %30 = tpu.dynamic_rotate %0 by %c239_i32 dim 1 : vector<8x256xf32>, i32 -> vector<8x256xf32>
    %c8 = arith.constant 8 : index
    %c0_18 = arith.constant 0 : index
    %c0_19 = arith.constant 0 : index
    %31 = vector.load %arg1[%c8, %c0_18, %c0_19] : memref<9x8x256xf32, #tpu.memory_space<vmem>>, vector<1x8x256xf32>
    %32 = vector.shape_cast %31 : vector<1x8x256xf32> to vector<8x256xf32>
    %33 = arith.mulf %30, %32 : vector<8x256xf32>
    %34 = tpu.concatenate %5, %9, %13, %17, %0, %21, %25, %29, %33 in 0 : vector<8x256xf32>, vector<8x256xf32>, vector<8x256xf32>, vector<8x256xf32>, vector<8x256xf32>, vector<8x256xf32>, vector<8x256xf32>, vector<8x256xf32>, vector<8x256xf32> -> vector<72x256xf32>
    %cst = arith.constant dense<0.000000e+00> : vector<8x256xf32>
    %35 = tpu.matmul %1, %34, %cst {dimension_numbers = #tpu.dot_dimension_numbers<[1], [0], [0], [1], [0, 0, 1, 1], [], []>, precision = #tpu.contract_precision<fp32>} : vector<8x72xf32>, vector<72x256xf32>, vector<8x256xf32> -> vector<8x256xf32>
    %c0_20 = arith.constant 0 : index
    %c0_21 = arith.constant 0 : index
    %36 = vector.load %arg3[%c0_20, %c0_21] : memref<8x256xf32, #tpu.memory_space<vmem>>, vector<8x256xf32>
    %37 = arith.addf %35, %36 : vector<8x256xf32>
    %cst_22 = arith.constant 2.000000e-01 : f32
    %38 = vector.broadcast %cst_22 : f32 to vector<8x256xf32>
    %39 = arith.mulf %38, %37 : vector<8x256xf32>
    %40 = arith.maximumf %37, %39 : vector<8x256xf32>
    %c0_23 = arith.constant 0 : index
    %c0_24 = arith.constant 0 : index
    %41 = vector.load %arg4[%c0_23, %c0_24] : memref<8x72xf32, #tpu.memory_space<vmem>>, vector<8x72xf32>
    %c17_i32_25 = arith.constant 17 : i32
    %42 = tpu.dynamic_rotate %40 by %c17_i32_25 dim 1 : vector<8x256xf32>, i32 -> vector<8x256xf32>
    %c0_26 = arith.constant 0 : index
    %c0_27 = arith.constant 0 : index
    %c0_28 = arith.constant 0 : index
    %43 = vector.load %arg1[%c0_26, %c0_27, %c0_28] : memref<9x8x256xf32, #tpu.memory_space<vmem>>, vector<1x8x256xf32>
    %44 = vector.shape_cast %43 : vector<1x8x256xf32> to vector<8x256xf32>
    %45 = arith.mulf %42, %44 : vector<8x256xf32>
    %c16_i32_29 = arith.constant 16 : i32
    %46 = tpu.dynamic_rotate %40 by %c16_i32_29 dim 1 : vector<8x256xf32>, i32 -> vector<8x256xf32>
    %c1_30 = arith.constant 1 : index
    %c0_31 = arith.constant 0 : index
    %c0_32 = arith.constant 0 : index
    %47 = vector.load %arg1[%c1_30, %c0_31, %c0_32] : memref<9x8x256xf32, #tpu.memory_space<vmem>>, vector<1x8x256xf32>
    %48 = vector.shape_cast %47 : vector<1x8x256xf32> to vector<8x256xf32>
    %49 = arith.mulf %46, %48 : vector<8x256xf32>
    %c15_i32_33 = arith.constant 15 : i32
    %50 = tpu.dynamic_rotate %40 by %c15_i32_33 dim 1 : vector<8x256xf32>, i32 -> vector<8x256xf32>
    %c2_34 = arith.constant 2 : index
    %c0_35 = arith.constant 0 : index
    %c0_36 = arith.constant 0 : index
    %51 = vector.load %arg1[%c2_34, %c0_35, %c0_36] : memref<9x8x256xf32, #tpu.memory_space<vmem>>, vector<1x8x256xf32>
    %52 = vector.shape_cast %51 : vector<1x8x256xf32> to vector<8x256xf32>
    %53 = arith.mulf %50, %52 : vector<8x256xf32>
    %c1_i32_37 = arith.constant 1 : i32
    %54 = tpu.dynamic_rotate %40 by %c1_i32_37 dim 1 : vector<8x256xf32>, i32 -> vector<8x256xf32>
    %c3_38 = arith.constant 3 : index
    %c0_39 = arith.constant 0 : index
    %c0_40 = arith.constant 0 : index
    %55 = vector.load %arg1[%c3_38, %c0_39, %c0_40] : memref<9x8x256xf32, #tpu.memory_space<vmem>>, vector<1x8x256xf32>
    %56 = vector.shape_cast %55 : vector<1x8x256xf32> to vector<8x256xf32>
    %57 = arith.mulf %54, %56 : vector<8x256xf32>
    %c255_i32_41 = arith.constant 255 : i32
    %58 = tpu.dynamic_rotate %40 by %c255_i32_41 dim 1 : vector<8x256xf32>, i32 -> vector<8x256xf32>
    %c5_42 = arith.constant 5 : index
    %c0_43 = arith.constant 0 : index
    %c0_44 = arith.constant 0 : index
    %59 = vector.load %arg1[%c5_42, %c0_43, %c0_44] : memref<9x8x256xf32, #tpu.memory_space<vmem>>, vector<1x8x256xf32>
    %60 = vector.shape_cast %59 : vector<1x8x256xf32> to vector<8x256xf32>
    %61 = arith.mulf %58, %60 : vector<8x256xf32>
    %c241_i32_45 = arith.constant 241 : i32
    %62 = tpu.dynamic_rotate %40 by %c241_i32_45 dim 1 : vector<8x256xf32>, i32 -> vector<8x256xf32>
    %c6_46 = arith.constant 6 : index
    %c0_47 = arith.constant 0 : index
    %c0_48 = arith.constant 0 : index
    %63 = vector.load %arg1[%c6_46, %c0_47, %c0_48] : memref<9x8x256xf32, #tpu.memory_space<vmem>>, vector<1x8x256xf32>
    %64 = vector.shape_cast %63 : vector<1x8x256xf32> to vector<8x256xf32>
    %65 = arith.mulf %62, %64 : vector<8x256xf32>
    %c240_i32_49 = arith.constant 240 : i32
    %66 = tpu.dynamic_rotate %40 by %c240_i32_49 dim 1 : vector<8x256xf32>, i32 -> vector<8x256xf32>
    %c7_50 = arith.constant 7 : index
    %c0_51 = arith.constant 0 : index
    %c0_52 = arith.constant 0 : index
    %67 = vector.load %arg1[%c7_50, %c0_51, %c0_52] : memref<9x8x256xf32, #tpu.memory_space<vmem>>, vector<1x8x256xf32>
    %68 = vector.shape_cast %67 : vector<1x8x256xf32> to vector<8x256xf32>
    %69 = arith.mulf %66, %68 : vector<8x256xf32>
    %c239_i32_53 = arith.constant 239 : i32
    %70 = tpu.dynamic_rotate %40 by %c239_i32_53 dim 1 : vector<8x256xf32>, i32 -> vector<8x256xf32>
    %c8_54 = arith.constant 8 : index
    %c0_55 = arith.constant 0 : index
    %c0_56 = arith.constant 0 : index
    %71 = vector.load %arg1[%c8_54, %c0_55, %c0_56] : memref<9x8x256xf32, #tpu.memory_space<vmem>>, vector<1x8x256xf32>
    %72 = vector.shape_cast %71 : vector<1x8x256xf32> to vector<8x256xf32>
    %73 = arith.mulf %70, %72 : vector<8x256xf32>
    %74 = tpu.concatenate %45, %49, %53, %57, %40, %61, %65, %69, %73 in 0 : vector<8x256xf32>, vector<8x256xf32>, vector<8x256xf32>, vector<8x256xf32>, vector<8x256xf32>, vector<8x256xf32>, vector<8x256xf32>, vector<8x256xf32>, vector<8x256xf32> -> vector<72x256xf32>
    %cst_57 = arith.constant dense<0.000000e+00> : vector<8x256xf32>
    %75 = tpu.matmul %41, %74, %cst_57 {dimension_numbers = #tpu.dot_dimension_numbers<[1], [0], [0], [1], [0, 0, 1, 1], [], []>, precision = #tpu.contract_precision<fp32>} : vector<8x72xf32>, vector<72x256xf32>, vector<8x256xf32> -> vector<8x256xf32>
    %c0_58 = arith.constant 0 : index
    %c0_59 = arith.constant 0 : index
    %76 = vector.load %arg5[%c0_58, %c0_59] : memref<8x256xf32, #tpu.memory_space<vmem>>, vector<8x256xf32>
    %77 = arith.addf %75, %76 : vector<8x256xf32>
    %78 = arith.addf %77, %0 : vector<8x256xf32>
    %c0_60 = arith.constant 0 : index
    %c0_61 = arith.constant 0 : index
    %79 = vector.load %arg7[%c0_60, %c0_61] : memref<8x256xf32, #tpu.memory_space<vmem>>, vector<8x256xf32>
    tpu.vector_store %arg7[%c0_60, %c0_61], %78 {strides = array<i32>} : memref<8x256xf32, #tpu.memory_space<vmem>>, vector<8x256xf32>,
    return
  }
  func.func @transform_0(%arg0: i32) -> (i32, i32, i32) {
    %c0_i32 = arith.constant 0 : i32
    %c0_i32_0 = arith.constant 0 : i32
    %c0_i32_1 = arith.constant 0 : i32
    %c0_i32_2 = arith.constant 0 : i32
    return %c0_i32, %c0_i32_0, %c0_i32_1 : i32, i32, i32
  }
  func.func @transform_1(%arg0: i32) -> (i32, i32) {
    %c0_i32 = arith.constant 0 : i32
    %c0_i32_0 = arith.constant 0 : i32
    %c0_i32_1 = arith.constant 0 : i32
    return %c0_i32, %c0_i32_0 : i32, i32
  }
  func.func @transform_2(%arg0: i32) -> (i32, i32) {
    %c0_i32 = arith.constant 0 : i32
    %c0_i32_0 = arith.constant 0 : i32
    %c0_i32_1 = arith.constant 0 : i32
    return %c0_i32, %c0_i32_0 : i32, i32
  }
  func.func @transform_3(%arg0: i32) -> (i32, i32) {
    %c0_i32 = arith.constant 0 : i32
    %c0_i32_0 = arith.constant 0 : i32
    %c0_i32_1 = arith.constant 0 : i32
    return %c0_i32, %c0_i32_0 : i32, i32
  }
  func.func @transform_4(%arg0: i32) -> (i32, i32) {
    %c0_i32 = arith.constant 0 : i32
    %c0_i32_0 = arith.constant 0 : i32
    %c0_i32_1 = arith.constant 0 : i32
    return %c0_i32, %c0_i32_0 : i32, i32
  }
  func.func @transform_5(%arg0: i32) -> (i32, i32) {
    %c0_i32 = arith.constant 0 : i32
    %c0_i32_0 = arith.constant 0 : i32
    return %arg0, %c0_i32 : i32, i32
  }
  func.func @transform_6(%arg0: i32) -> (i32, i32) {
    %c0_i32 = arith.constant 0 : i32
    %c0_i32_0 = arith.constant 0 : i32
    return %arg0, %c0_i32 : i32, i32
  }
}

</mosaic_0001>

<bundles_post_ra>
// kernel: tpu_custom_call.1
= control target key start
LH: loop header
LB: loop body
LE: loop exit
PB: predicated region body
PF: predicated region fallthrough
CT: control target
= control target key end

     0   :  { %11 = vsyncpa [#allocation3], 0  ;;  %s2657_s0 = inlined_call_operand.hbm [shape: f32[9,8,256], index: 0, kind: input, shape index: {}]   ;;  %s2658_s1 = inlined_call_operand.hbm [shape: f32[8,72], index: 1, kind: input, shape index: {}]   ;;  %s2659_s2 = inlined_call_operand.hbm [shape: f32[8,256], index: 2, kind: input, shape index: {}]   ;;  %s2660_s3 = inlined_call_operand.hbm [shape: f32[8,72], index: 3, kind: input, shape index: {}]   ;;  %s2661_s4 = inlined_call_operand.hbm [shape: f32[8,256], index: 4, kind: input, shape index: {}]   ;;  %s2662_s5 = inlined_call_operand.hbm [shape: f32[8,256], index: 5, kind: input, shape index: {}]   ;;  %s2663_s6 = inlined_call_operand.hbm [shape: f32[8,256], index: 6, kind: output, shape index: {}]  }
   0x1   :  { %12 = vsyncpa [#allocation6], 0 }
   0x2   :  { %13 = vsyncpa [#allocation9], 0 }
   0x3   :  { %14 = vsyncpa [#allocation12], 0 }
   0x4   :  { %15 = vsyncpa [#allocation4], 0  ;;  %s1813_s21 = smov [#allocation5]   ;;  %s1814_s23 = smov [#allocation8]  }
   0x5   :  { %s34_s22 = sshll.u32 %s1813_s21, 4  ;;  %s54_s24 = sshll.u32 %s1814_s23, 4  ;;  %s35_s22 = int_to_ptr.vmem [resolvable:$true] %s34_s22  ;;  %s55_s24 = int_to_ptr.vmem [resolvable:$true] %s54_s24 }
   0x6   :  { %s1671_s25 = scalar_lea.vmem %s35_s22, 128  ;;  %p1676_p1 = scmp.lt.s32.totalorder %s35_s22, %s35_s22 }
   0x7   :  { %p1672_p0 = scmp.ne.s32.totalorder %s35_s22, %s1671_s25  ;;  %p1677_p2 = scmp.lt.s32.totalorder %s1671_s25, %s1671_s25 }
   0x9   :  { %p1678_p3 = por %p1677_p2, %p1676_p1 }
   0xb   :  { %p1679_p4 = pnand %p1678_p3, %p1672_p0 }
   0xd   :  { %1682 = shalt.err (!%p1679_p4)
}
   0xe   :  { %37 = dma.hbm_to_vmem [thread:$0]  %s2658_s1, 128, %s35_s22, [#allocation6]  }
   0xf   :  { %s1691_s28 = scalar_lea.vmem %s55_s24, 128  ;;  %p1696_p6 = scmp.lt.s32.totalorder %s55_s24, %s55_s24 }
  0x10   :  { %p1692_p5 = scmp.ne.s32.totalorder %s55_s24, %s1691_s28  ;;  %p1697_p7 = scmp.lt.s32.totalorder %s1691_s28, %s1691_s28 }
  0x12   :  { %p1698_p8 = por %p1697_p7, %p1696_p6 }
  0x14   :  { %p1699_p9 = pnand %p1698_p8, %p1692_p5 }
  0x16   :  { %1702 = shalt.err (!%p1699_p9)
}
  0x17   :  { %57 = dma.hbm_to_vmem [thread:$0]  %s2660_s3, 128, %s55_s24, [#allocation9]  }
  0x18   :  { %s1815_s7 = smov [#allocation2]  }
  0x19   :  { %s21_s8 = sshll.u32 %s1815_s7, 4  ;;  %s22_s8 = int_to_ptr.vmem [resolvable:$true] %s21_s8 }
  0x1a   :  { %s1711_s9 = scalar_lea.vmem %s22_s8, 2304  ;;  %p1716_p11 = scmp.lt.s32.totalorder %s22_s8, %s22_s8 }
  0x1b   :  { %p1712_p10 = scmp.ne.s32.totalorder %s22_s8, %s1711_s9  ;;  %p1717_p12 = scmp.lt.s32.totalorder %s1711_s9, %s1711_s9 }
  0x1d   :  { %p1718_p13 = por %p1717_p12, %p1716_p11 }
  0x1f   :  { %p1719_p0 = pnand %p1718_p13, %p1712_p10 }
  0x21   :  { %1722 = shalt.err (!%p1719_p0)
}
  0x22   :  { %s1816_s1 = smov 256   ;;  %s1817_s10 = smov 16  }
  0x23   :  { %27 = dma.hbm_to_vmem [thread:$0]  %s2657_s0, 2304, %s22_s8, [#allocation3], %s1816_s1, %s1816_s1, %s1817_s10  }
  0x24   :  { %s1818_s13 = smov [#allocation7]   ;;  %s1819_s3 = smov [#allocation10]  }
  0x25   :  { %s44_s14 = sshll.u32 %s1818_s13, 4  ;;  %s64_s15 = sshll.u32 %s1819_s3, 4  ;;  %s45_s14 = int_to_ptr.vmem [resolvable:$true] %s44_s14  ;;  %s65_s15 = int_to_ptr.vmem [resolvable:$true] %s64_s15 }
  0x26   :  { %s1731_s16 = scalar_lea.vmem %s45_s14, 256  ;;  %p1736_p2 = scmp.lt.s32.totalorder %s45_s14, %s45_s14 }
  0x27   :  { %p1732_p1 = scmp.ne.s32.totalorder %s45_s14, %s1731_s16  ;;  %p1737_p3 = scmp.lt.s32.totalorder %s1731_s16, %s1731_s16 }
  0x29   :  { %p1738_p4 = por %p1737_p3, %p1736_p2 }
  0x2b   :  { %p1739_p5 = pnand %p1738_p4, %p1732_p1 }
  0x2d   :  { %1742 = shalt.err (!%p1739_p5)
}
  0x2e   :  { %47 = dma.hbm_to_vmem [thread:$0]  %s2659_s2, 256, %s45_s14, [#allocation6]  }
  0x2f   :  { %s1751_s19 = scalar_lea.vmem %s65_s15, 256  ;;  %p1756_p7 = scmp.lt.s32.totalorder %s65_s15, %s65_s15 }
  0x30   :  { %p1752_p6 = scmp.ne.s32.totalorder %s65_s15, %s1751_s19  ;;  %p1757_p8 = scmp.lt.s32.totalorder %s1751_s19, %s1751_s19 }
  0x32   :  { %p1758_p9 = por %p1757_p8, %p1756_p7 }
  0x34   :  { %p1759_p10 = pnand %p1758_p9, %p1752_p6 }
  0x36   :  { %1762 = shalt.err (!%p1759_p10)
}
  0x37   :  { %67 = dma.hbm_to_vmem [thread:$0]  %s2661_s4, 256, %s65_s15, [#allocation9]  }
  0x38   :  { %s1820_s21 = smov [#allocation11]  }
  0x39   :  { %s74_s22 = sshll.u32 %s1820_s21, 4  ;;  %s75_s22 = int_to_ptr.vmem [resolvable:$true] %s74_s22 }
  0x3a   :  { %s1771_s23 = scalar_lea.vmem %s75_s22, 256  ;;  %p1776_p12 = scmp.lt.s32.totalorder %s75_s22, %s75_s22 }
  0x3b   :  { %p1772_p11 = scmp.ne.s32.totalorder %s75_s22, %s1771_s23  ;;  %p1777_p13 = scmp.lt.s32.totalorder %s1771_s23, %s1771_s23 }
  0x3d   :  { %p1778_p0 = por %p1777_p13, %p1776_p12 }
  0x3f   :  { %p1779_p1 = pnand %p1778_p0, %p1772_p11 }
  0x41   :  { %1782 = shalt.err (!%p1779_p1)
}
  0x42   :  { %77 = dma.hbm_to_vmem [thread:$0]  %s2662_s5, 256, %s75_s22, [#allocation12]  }
  0x43   :  { %1803 = dma.done.wait [#allocation3], 2304  }
  0x44   :  { %1804 = vsyncadd [#allocation3], 4294964992 }
  0x45   :  { %1805 = dma.done.wait [#allocation6], 384  }
  0x46   :  { %1806 = vsyncadd [#allocation6], 4294966912 }
  0x47   :  { %1807 = dma.done.wait [#allocation9], 384  }
  0x48   :  { %1808 = vsyncadd [#allocation9], 4294966912 }
  0x49   :  { %1809 = dma.done.wait [#allocation12], 256  }
  0x4a   :  { %1810 = vsyncadd [#allocation12], 4294967040  ;;  %v96_v0 = vld [vmem:[#allocation11] sm:$0xff]  ;;  %s1821_s4 = smov 112   ;;  %s1822_s25 = smov 111   ;;  %v97_v1 = vld [vmem:[#allocation11 + $0x8] sm:$0xff]  ;;  %v103_v3 = vlaneseq }
  0x4b   :  { %172 = vrot.lane.b32.xlu1 %v96_v0, %s1821_s4  ;;  %184 = vrot.lane.b32.xlu0 %v96_v0, %s1822_s25  ;;  %s1823_s5 = smov 113   ;;  %s1824_s26 = smov 127   ;;  %v2674_v2 = vmov 0.0   ;;  %v1902_v4 = vand.u32 4294901760, %v97_v1  ;;  %v1904_v5 = vand.u32 4294901760, %v96_v0  ;;  %v1915_v11 = vld [vmem:[#allocation2 + $0x70] sm:$0xff] }
  0x4c   :  { %s1825_s27 = smov 1   ;;  %s1826_s28 = smov 15   ;;  %284 = vmatprep.mubr.f32.mxu0 %v2674_v2  ;;  %450 = vmatprep.mubr.f32.mxu1 %v2674_v2  ;;  %v1906_v6 = vand.u32 127, %v103_v3  ;;  %v1918_v12 = vld [vmem:[#allocation2 + $0x78] sm:$0xff]  ;;  %v1920_v13 = vld [vmem:[#allocation2 + $0x80] sm:$0xff]  ;;  %v1922_v14 = vld [vmem:[#allocation2 + $0x88] sm:$0xff] }
  0x4d   :  { %s1828_s29 = smov 17   ;;  %v1909_v7 = vsub.f32 %v97_v1, %v1902_v4  ;;  %v1912_v10 = vsub.f32 %v96_v0, %v1904_v5  ;;  %v98_v19 = vld [vmem:[#allocation5] sm:$0xff]  ;;  %vm198_vm3 = vcmask 588800   ;;  %v1954_v35 = vld [vmem:[#allocation2 + $0x60] sm:$0xff]  ;;  %v1956_v36 = vld [vmem:[#allocation2 + $0x68] sm:$0xff]  ;;  %s1829_s30 = smov [#allocation13]  }
  0x4e   :  { %vm176_vm0 = vcmp.lt.s32.totalorder %v1906_v6, 112  ;;  %vm188_vm1 = vcmp.lt.s32.totalorder %v1906_v6, 111  ;;  %vm164_vm2 = vcmp.lt.s32.totalorder %v1906_v6, 113  ;;  %vm152_vm4 = vcmp.lt.s32.totalorder %v1906_v6, 127  ;;  %v1985_v47 = vld [vmem:[#allocation2 + $0x50] sm:$0xff]  ;;  %v1987_v48 = vld [vmem:[#allocation2 + $0x58] sm:$0xff] }
  0x4f   :  { %174 = vrot.lane.b32.xlu1 %v97_v1, %s1821_s4  ;;  %186 = vrot.lane.b32.xlu0 %v97_v1, %s1822_s25  ;;  %v2665_v15 = vand.u32 4294901760, %v1909_v7  ;;  %v2664_v18 = vand.u32 4294901760, %v1912_v10  ;;  %v200_v29 = vsel %vm198_vm3, %v98_v19, 0  ;;  %vm140_vm5 = vcmp.lt.s32.totalorder %v1906_v6, 1  ;;  %s1632_s7 = sshll.u32 %s1829_s30, 4  ;;  %s1633_s7 = int_to_ptr.vmem [resolvable:$true] %s1632_s7 }
  0x50   :  { %vm128_vm6 = vcmp.lt.s32.totalorder %v1906_v6, 15  ;;  %v1990_v50 = vand.u32 4294901760, %v200_v29  ;;  %vm116_vm7 = vcmp.lt.s32.totalorder %v1906_v6, 16  ;;  %vm105_vm8 = vcmp.lt.s32.totalorder %v1906_v6, 17  ;;  %s1783_s8 = scalar_lea.vmem %s1633_s7, 256  ;;  %p1788_p3 = scmp.lt.s32.totalorder %s1633_s7, %s1633_s7 }
  0x51   :  { %v1943_v28 = vsub.f32 %v1909_v7, %v2665_v15  ;;  %v1966_v40 = vsub.f32 %v1912_v10, %v2664_v18  ;;  %v2090_v15 = vld [vmem:[#allocation2 + $0x10] sm:$0xff]  ;;  %p1784_p2 = scmp.ne.s32.totalorder %s1633_s7, %s1783_s8  ;;  %p1789_p4 = scmp.lt.s32.totalorder %s1783_s8, %s1783_s8 }
  0x52   :  { %2689 = vst [vmem:[#allocation21_spill] sm:$0xff] %v2090_v15 }
  0x53   :  { %162 = vrot.lane.b32.xlu1 %v97_v1, %s1823_s5  ;;  %160 = vrot.lane.b32.xlu0 %v96_v0, %s1823_s5  ;;  %p1790_p5 = por %p1789_p4, %p1788_p3 }
  0x55   :  { %p1791_p6 = pnand %p1790_p5, %p1784_p2 }
  0x57   :  { %150 = vrot.lane.b32.xlu1 %v97_v1, %s1824_s26  ;;  %148 = vrot.lane.b32.xlu0 %v96_v0, %s1824_s26 }
  0x5b   :  { %138 = vrot.lane.b32.xlu1 %v97_v1, %s1825_s27  ;;  %136 = vrot.lane.b32.xlu0 %v96_v0, %s1825_s27 }
  0x5f   :  { %126 = vrot.lane.b32.xlu1 %v97_v1, %s1826_s28  ;;  %124 = vrot.lane.b32.xlu0 %v96_v0, %s1826_s28 }
  0x63   :  { %114 = vrot.lane.b32.xlu1 %v97_v1, %s1817_s10  ;;  %112 = vrot.lane.b32.xlu0 %v96_v0, %s1817_s10 }
  0x67   :  { %101 = vrot.lane.b32.xlu1 %v97_v1, %s1828_s29  ;;  %99 = vrot.lane.b32.xlu0 %v96_v0, %s1828_s29 }
  0xbd   :  { %v173_v8 = vpop.permute.xlu1 %172  ;;  %v185_v9 = vpop.permute.xlu0 %184 }
  0xc1   :  { %v175_v16 = vpop.permute.xlu1 %174  ;;  %v187_v17 = vpop.permute.xlu0 %186 }
  0xc2   :  { %v177_v20 = vsel %vm176_vm0, %v173_v8, %v175_v16  ;;  %v178_v21 = vsel %vm176_vm0, %v175_v16, %v173_v8  ;;  %v189_v22 = vsel %vm188_vm1, %v185_v9, %v187_v17  ;;  %v190_v23 = vsel %vm188_vm1, %v187_v17, %v185_v9  ;;  %v2022_v8 = vld [vmem:[#allocation2 + $0x30] sm:$0xff]  ;;  %v2024_v9 = vld [vmem:[#allocation2 + $0x38] sm:$0xff] }
  0xc3   :  { %v182_v24 = vmul.f32 %v1915_v11, %v177_v20  ;;  %v183_v25 = vmul.f32 %v1918_v12, %v178_v21  ;;  %v194_v26 = vmul.f32 %v1920_v13, %v189_v22  ;;  %v195_v27 = vmul.f32 %v1922_v14, %v190_v23 }
  0xc5   :  { %v1946_v30 = vand.u32 4294901760, %v183_v25  ;;  %v1948_v31 = vand.u32 4294901760, %v182_v24  ;;  %v1950_v32 = vand.u32 4294901760, %v195_v27  ;;  %v1952_v33 = vand.u32 4294901760, %v194_v26  ;;  %v163_v34 = vpop.permute.xlu1 %162  ;;  %v161_v37 = vpop.permute.xlu0 %160 }
  0xc6   :  { %v165_v38 = vsel %vm164_vm2, %v161_v37, %v163_v34  ;;  %v166_v39 = vsel %vm164_vm2, %v163_v34, %v161_v37  ;;  %v2043_v34 = vsub.f32 %v200_v29, %v1990_v50  ;;  %v2056_v29 = vld [vmem:[#allocation2 + $0x20] sm:$0xff] }
  0xc7   :  { %v1969_v41 = vsub.f32 %v183_v25, %v1946_v30  ;;  %v1972_v42 = vsub.f32 %v182_v24, %v1948_v31  ;;  %v1975_v43 = vsub.f32 %v195_v27, %v1950_v32  ;;  %v1978_v44 = vsub.f32 %v194_v26, %v1952_v33  ;;  %217 = vmatprep.subr.mxu0 %v1950_v32 }
  0xc8   :  { %v170_v45 = vmul.f32 %v1954_v35, %v165_v38  ;;  %v171_v46 = vmul.f32 %v1956_v36, %v166_v39  ;;  %219 = vmatpush1.msra.mxu0 %v1952_v33  ;;  %2687 = vst [vmem:[#allocation19_spill] sm:$0xff] %v2056_v29 }
  0xc9   :  { %v151_v51 = vpop.permute.xlu1 %150  ;;  %221 = vmatprep.subr.mxu0 %v1946_v30  ;;  %v149_v52 = vpop.permute.xlu0 %148  ;;  %v2673_v53 = vand.u32 4294901760, %v1975_v43  ;;  %v2672_v54 = vand.u32 4294901760, %v1978_v44  ;;  %v2669_v55 = vand.u32 4294901760, %v1969_v41  ;;  %v2668_v56 = vand.u32 4294901760, %v1972_v42 }
  0xca   :  { %v1997_v57 = vand.u32 4294901760, %v171_v46  ;;  %v1999_v58 = vand.u32 4294901760, %v170_v45  ;;  %v153_v59 = vsel %vm152_vm4, %v149_v52, %v151_v51  ;;  %v154_v60 = vsel %vm152_vm4, %v151_v51, %v149_v52  ;;  %223 = vmatpush1.msra.mxu0 %v1948_v31  ;;  %v2058_v51 = vld [vmem:[#allocation2 + $0x28] sm:$0xff] }
  0xcb   :  { %v158_v61 = vmul.f32 %v1985_v47, %v153_v59  ;;  %v159_v62 = vmul.f32 %v1987_v48, %v154_v60  ;;  %v313_v63 = vsub.f32 %v1975_v43, %v2673_v53  ;;  %v319_v0 = vsub.f32 %v1978_v44, %v2672_v54  ;;  %2688 = vst [vmem:[#allocation20_spill] sm:$0xff] %v2058_v51 }
  0xcc   :  { %v2016_v1 = vsub.f32 %v171_v46, %v1997_v57  ;;  %v2019_v3 = vsub.f32 %v170_v45, %v1999_v58  ;;  %225 = vmatprep.subr.mxu0 %v1997_v57  ;;  %v325_v16 = vsub.f32 %v1969_v41, %v2669_v55  ;;  %v331_v17 = vsub.f32 %v1972_v42, %v2668_v56 }
  0xcd   :  { %v2032_v19 = vand.u32 4294901760, %v159_v62  ;;  %v2034_v20 = vand.u32 4294901760, %v158_v61  ;;  %227 = vmatpush1.msra.mxu0 %v1999_v58  ;;  %v139_v21 = vpop.permute.xlu1 %138  ;;  %v137_v22 = vpop.permute.xlu0 %136  ;;  %v314_v23 = vand.u32 4294901760, %v313_v63  ;;  %v320_v24 = vand.u32 4294901760, %v319_v0 }
  0xce   :  { %v141_v25 = vsel %vm140_vm5, %v137_v22, %v139_v21  ;;  %v142_v26 = vsel %vm140_vm5, %v139_v21, %v137_v22  ;;  %v326_v46 = vand.u32 4294901760, %v325_v16  ;;  %v332_v52 = vand.u32 4294901760, %v331_v17 }
  0xcf   :  { %v2046_v37 = vsub.f32 %v159_v62, %v2032_v19  ;;  %v2049_v38 = vsub.f32 %v158_v61, %v2034_v20  ;;  %v146_v39 = vmul.f32 %v2022_v8, %v142_v26  ;;  %v147_v45 = vmul.f32 %v2024_v9, %v141_v25  ;;  %229 = vmatprep.subr.mxu0 %v2032_v19 }
  0xd0   :  { %315 = vmatprep.subr.mxu1 %v314_v23  ;;  %231 = vmatpush1.msra.mxu0 %v2034_v20  ;;  %v2666_v59 = vand.u32 4294901760, %v2016_v1  ;;  %v2667_v60 = vand.u32 4294901760, %v2019_v3 }
  0xd1   :  { %v2062_v61 = vand.u32 4294901760, %v147_v45  ;;  %v2064_v62 = vand.u32 4294901760, %v146_v39  ;;  %321 = vmatpush1.msra.mxu1 %v320_v24  ;;  %v127_v63 = vpop.permute.xlu1 %126  ;;  %233 = vmatprep.subr.mxu0 %v1902_v4  ;;  %v125_v0 = vpop.permute.xlu0 %124  ;;  %v2670_v16 = vand.u32 4294901760, %v2046_v37  ;;  %v2671_v21 = vand.u32 4294901760, %v2049_v38 }
  0xd2   :  { %327 = vmatprep.subr.mxu1 %v326_v46  ;;  %v129_v17 = vsel %vm128_vm6, %v125_v0, %v127_v63  ;;  %v130_v22 = vsel %vm128_vm6, %v127_v63, %v125_v0  ;;  %235 = vmatpush1.msra.mxu0 %v1904_v5  ;;  %v337_v23 = vsub.f32 %v2016_v1, %v2666_v59  ;;  %v2680_v24 = vand.u32 4294901760, %v2043_v34  ;;  %v2092_v59 = vld [vmem:[#allocation2 + $0x18] sm:$0xff] }
  0xd3   :  { %v2079_v25 = vsub.f32 %v147_v45, %v2062_v61  ;;  %v2082_v26 = vsub.f32 %v146_v39, %v2064_v62  ;;  %v134_v46 = vmul.f32 %v2056_v29, %v130_v22  ;;  %v135_v18 = vmul.f32 %v2058_v51, %v129_v17  ;;  %333 = vmatpush1.msra.mxu1 %v332_v52 }
  0xd4   :  { %237 = vmatprep.subr.mxu0 %v2062_v61  ;;  %v338_v63 = vand.u32 4294901760, %v337_v23  ;;  %v343_v0 = vsub.f32 %v2019_v3, %v2667_v60  ;;  %2690 = vst [vmem:[#allocation22_spill] sm:$0xff] %v2092_v59  ;;  %v349_v39 = vsub.f32 %v2046_v37, %v2670_v16  ;;  %v355_v45 = vsub.f32 %v2049_v38, %v2671_v21 }
  0xd5   :  { %v2100_v52 = vand.u32 4294901760, %v135_v18  ;;  %v2102_v17 = vand.u32 4294901760, %v134_v46  ;;  %239 = vmatpush1.msra.mxu0 %v2064_v62  ;;  %v115_v22 = vpop.permute.xlu1 %114  ;;  %v113_v23 = vpop.permute.xlu0 %112  ;;  %v2677_v60 = vand.u32 4294901760, %v2079_v25  ;;  %v2678_v56 = vand.u32 4294901760, %v2082_v26 }
  0xd6   :  { %339 = vmatprep.subr.mxu1 %v338_v63  ;;  %v344_v55 = vand.u32 4294901760, %v343_v0  ;;  %v117_v16 = vsel %vm116_vm7, %v113_v23, %v115_v22  ;;  %v118_v21 = vsel %vm116_vm7, %v115_v22, %v113_v23  ;;  %v350_v54 = vand.u32 4294901760, %v349_v39  ;;  %v2121_v0 = vld [vmem:[#allocation2] sm:$0xff]  ;;  %v2123_v22 = vld [vmem:[#allocation2 + $0x8] sm:$0xff] }
  0xd7   :  { %v2112_v53 = vsub.f32 %v135_v18, %v2100_v52  ;;  %v2115_v2 = vsub.f32 %v134_v46, %v2102_v17  ;;  %v122_v27 = vmul.f32 %v2090_v15, %v118_v21  ;;  %v123_v49 = vmul.f32 %v2092_v59, %v117_v16  ;;  %241 = vmatprep.subr.mxu0 %v2100_v52 }
  0xd8   :  { %345 = vmatpush1.msra.mxu1 %v344_v55  ;;  %243 = vmatpush1.msra.mxu0 %v2102_v17  ;;  %v356_v63 = vand.u32 4294901760, %v355_v45  ;;  %v373_v18 = vsub.f32 %v2079_v25, %v2677_v60  ;;  %v379_v21 = vsub.f32 %v2082_v26, %v2678_v56  ;;  %v288_v16 = vsub.f32 %v2043_v34, %v2680_v24 }
  0xd9   :  { %v2134_v55 = vand.u32 4294901760, %v123_v49  ;;  %v2136_v46 = vand.u32 4294901760, %v122_v27  ;;  %351 = vmatprep.subr.mxu1 %v350_v54  ;;  %v102_v39 = vpop.permute.xlu1 %101  ;;  %v100_v45 = vpop.permute.xlu0 %99  ;;  %v2691_v29 = vand.u32 4294901760, %v1943_v28  ;;  %v2692_v23 = vand.u32 4294901760, %v1966_v40 }
  0xda   :  { %357 = vmatpush1.msra.mxu1 %v356_v63  ;;  %v106_v60 = vsel %vm105_vm8, %v100_v45, %v102_v39  ;;  %v107_v56 = vsel %vm105_vm8, %v102_v39, %v100_v45  ;;  %v374_v15 = vand.u32 4294901760, %v373_v18  ;;  %v380_v24 = vand.u32 4294901760, %v379_v21 }
  0xdb   :  { %v2145_v51 = vsub.f32 %v123_v49, %v2134_v55  ;;  %v2148_v54 = vsub.f32 %v122_v27, %v2136_v46  ;;  %363 = vmatprep.subr.mxu1 %v2691_v29  ;;  %v110_v59 = vmul.f32 %v2121_v0, %v107_v56  ;;  %v111_v63 = vmul.f32 %v2123_v22, %v106_v60 }
  0xdc   :  { %369 = vmatpush1.msra.mxu1 %v2692_v23  ;;  %245 = vmatprep.subr.mxu0 %v2134_v55  ;;  %v2693_v18 = vand.u32 4294901760, %v2112_v53  ;;  %v2694_v21 = vand.u32 4294901760, %v2115_v2  ;;  %v289_v45 = vand.u32 4294901760, %v288_v16 }
  0xdd   :  { %v2163_v39 = vand.u32 4294901760, %v111_v63  ;;  %v2165_v28 = vand.u32 4294901760, %v110_v59  ;;  %375 = vmatprep.subr.mxu1 %v374_v15  ;;  %247 = vmatpush1.msra.mxu0 %v2136_v46  ;;  %v396_v40 = vand.u32 4294901760, %v2145_v51  ;;  %v402_v56 = vand.u32 4294901760, %v2148_v54 }
  0xde   :  { %v385_v49 = vsub.f32 %v2112_v53, %v2693_v18  ;;  %v391_v27 = vsub.f32 %v2115_v2, %v2694_v21  ;;  %381 = vmatpush1.msra.mxu1 %v380_v24 }
  0xdf   :  { %v2171_v23 = vsub.f32 %v111_v63, %v2163_v39  ;;  %v2174_v18 = vsub.f32 %v110_v59, %v2165_v28  ;;  %249 = vmatprep.subr.mxu0 %v2163_v39  ;;  %v397_v15 = vsub.f32 %v2145_v51, %v396_v40  ;;  %v403_v21 = vsub.f32 %v2148_v54, %v402_v56 }
  0xe0   :  { %v386_v29 = vand.u32 4294901760, %v385_v49  ;;  %v392_v60 = vand.u32 4294901760, %v391_v27  ;;  %251 = vmatpush1.msra.mxu0 %v2165_v28 }
  0xe1   :  { %474 = vmatprep.subr.mxu0 %v1975_v43  ;;  %v398_v24 = vand.u32 4294901760, %v397_v15  ;;  %v404_v16 = vand.u32 4294901760, %v403_v21  ;;  %v408_v59 = vand.u32 4294901760, %v2171_v23  ;;  %v414_v63 = vand.u32 4294901760, %v2174_v18  ;;  %290 = vmatmul.mubr.f32.vlgmr.msra.gmra.mxu0 %v289_v45 }
  0xe2   :  { %387 = vmatprep.subr.mxu1 %v386_v29  ;;  %477 = vmatpush1.msra.mxu0 %v1978_v44  ;;  %v2695_v15 = vmov 0.0   ;;  %v2696_v45 = vand.u32 4294901760, %v1975_v43  ;;  %v2697_v21 = vand.u32 4294901760, %v1978_v44  ;;  %v2700_v43 = vand.u32 4294901760, %v2016_v1 }
  0xe3   :  { %393 = vmatpush1.msra.mxu1 %v392_v60  ;;  %v409_v49 = vsub.f32 %v2171_v23, %v408_v59  ;;  %v415_v27 = vsub.f32 %v2174_v18, %v414_v63  ;;  %480 = vmatprep.subr.mxu0 %v1969_v41  ;;  %v2701_v44 = vand.u32 4294901760, %v2019_v3 }
  0xe4   :  { %399 = vmatprep.subr.mxu1 %v398_v24  ;;  %483 = vmatpush1.msra.mxu0 %v1972_v42  ;;  %v2698_v24 = vand.u32 4294901760, %v1969_v41  ;;  %v2702_v41 = vand.u32 4294901760, %v2046_v37 }
  0xe5   :  { %405 = vmatpush1.msra.mxu1 %v404_v16  ;;  %v410_v29 = vand.u32 4294901760, %v409_v49  ;;  %v416_v60 = vand.u32 4294901760, %v415_v27  ;;  %558 = vmatprep.mubr.f32.mxu0 %v2695_v15  ;;  %v2699_v16 = vand.u32 4294901760, %v1972_v42  ;;  %v2703_v42 = vand.u32 4294901760, %v2049_v38 }
  0xe6   :  { %486 = vmatprep.subr.mxu0 %v2016_v1  ;;  %v2704_v1 = vand.u32 4294901760, %v2043_v34  ;;  %v2705_v49 = vand.u32 4294901760, %v1909_v7 }
  0xe7   :  { %489 = vmatpush1.msra.mxu0 %v2019_v3  ;;  %411 = vmatprep.subr.mxu1 %v410_v29  ;;  %v2706_v3 = vand.u32 4294901760, %v1912_v10 }
  0xe8   :  { %492 = vmatprep.subr.mxu0 %v2046_v37  ;;  %417 = vmatpush1.msra.mxu1 %v416_v60  ;;  %v2707_v37 = vand.u32 4294901760, %v2079_v25 }
  0xe9   :  { %495 = vmatpush1.msra.mxu0 %v2049_v38  ;;  %452 = vmatmul.mubr.f32.vlgmr.msra.gmra.mxu1 %v1990_v50  ;;  %v2708_v38 = vand.u32 4294901760, %v2082_v26 }
  0xea   :  { %498 = vmatprep.subr.mxu0 %v1909_v7  ;;  %582 = vmatprep.subr.mxu1 %v1950_v32  ;;  %v2709_v7 = vand.u32 4294901760, %v2112_v53 }
  0xeb   :  { %501 = vmatpush1.msra.mxu0 %v1912_v10  ;;  %584 = vmatpush1.msra.mxu1 %v1952_v33  ;;  %v2710_v10 = vand.u32 4294901760, %v2115_v2 }
  0xec   :  { %504 = vmatprep.subr.mxu0 %v2079_v25  ;;  %586 = vmatprep.subr.mxu1 %v1946_v30 }
  0xed   :  { %507 = vmatpush1.msra.mxu0 %v2082_v26  ;;  %588 = vmatpush1.msra.mxu1 %v1948_v31 }
  0xee   :  { %510 = vmatprep.subr.mxu0 %v2112_v53  ;;  %590 = vmatprep.subr.mxu1 %v1997_v57 }
  0xef   :  { %513 = vmatpush1.msra.mxu0 %v2115_v2  ;;  %592 = vmatpush1.msra.mxu1 %v1999_v58 }
  0xf0   :  { %516 = vmatprep.subr.mxu0 %v2145_v51  ;;  %594 = vmatprep.subr.mxu1 %v2032_v19 }
  0xf1   :  { %519 = vmatpush1.msra.mxu0 %v2148_v54  ;;  %596 = vmatpush1.msra.mxu1 %v2034_v20 }
  0xf2   :  { %522 = vmatprep.subr.mxu0 %v2171_v23  ;;  %598 = vmatprep.subr.mxu1 %v1902_v4 }
  0xf3   :  { %525 = vmatpush1.msra.mxu0 %v2174_v18  ;;  %600 = vmatpush1.msra.mxu1 %v1904_v5 }
  0xf4   :  { %561 = vmatmul.mubr.f32.vlgmr.msra.gmra.mxu0 %v2043_v34  ;;  %602 = vmatprep.subr.mxu1 %v2062_v61 }
  0xf5   :  { %676 = vmatprep.subr.mxu0 %v2696_v45  ;;  %604 = vmatpush1.msra.mxu1 %v2064_v62 }
  0xf6   :  { %680 = vmatpush1.msra.mxu0 %v2697_v21  ;;  %606 = vmatprep.subr.mxu1 %v2100_v52 }
  0xf7   :  { %684 = vmatprep.subr.mxu0 %v2698_v24  ;;  %608 = vmatpush1.msra.mxu1 %v2102_v17 }
  0xf8   :  { %688 = vmatpush1.msra.mxu0 %v2699_v16  ;;  %610 = vmatprep.subr.mxu1 %v2134_v55 }
  0xf9   :  { %692 = vmatprep.subr.mxu0 %v2700_v43  ;;  %612 = vmatpush1.msra.mxu1 %v2136_v46 }
  0xfa   :  { %696 = vmatpush1.msra.mxu0 %v2701_v44  ;;  %614 = vmatprep.subr.mxu1 %v2163_v39 }
  0xfb   :  { %700 = vmatprep.subr.mxu0 %v2702_v41  ;;  %616 = vmatpush1.msra.mxu1 %v2165_v28 }
  0xfc   :  { %649 = vmatprep.mubr.f32.mxu1 %v2695_v15  ;;  %704 = vmatpush1.msra.mxu0 %v2703_v42 }
  0xfd   :  { %653 = vmatmul.mubr.f32.vlgmr.msra.gmra.mxu1 %v2704_v1  ;;  %708 = vmatprep.subr.mxu0 %v2705_v49 }
  0xfe   :  { %800 = vmatprep.subr.mxu1 %v1950_v32  ;;  %712 = vmatpush1.msra.mxu0 %v2706_v3 }
  0xff   :  { %802 = vmatpush1.msra.mxu1 %v1952_v33  ;;  %716 = vmatprep.subr.mxu0 %v2707_v37 }
 0x100   :  { %804 = vmatprep.subr.mxu1 %v1946_v30  ;;  %720 = vmatpush1.msra.mxu0 %v2708_v38 }
 0x101   :  { %806 = vmatpush1.msra.mxu1 %v1948_v31  ;;  %724 = vmatprep.subr.mxu0 %v2709_v7  ;;  %v197_v31 = vld [vmem:[#allocation7 + $0x8] sm:$0xff] }
 0x102   :  { %808 = vmatprep.subr.mxu1 %v1997_v57  ;;  %728 = vmatpush1.msra.mxu0 %v2710_v10 }
 0x103   :  { %810 = vmatpush1.msra.mxu1 %v1999_v58  ;;  %732 = vmatprep.subr.mxu0 %v396_v40 }
 0x104   :  { %812 = vmatprep.subr.mxu1 %v2032_v19  ;;  %736 = vmatpush1.msra.mxu0 %v402_v56 }
 0x105   :  { %814 = vmatpush1.msra.mxu1 %v2034_v20  ;;  %740 = vmatprep.subr.mxu0 %v408_v59 }
 0x106   :  { %816 = vmatprep.subr.mxu1 %v1902_v4  ;;  %744 = vmatpush1.msra.mxu0 %v414_v63  ;;  %v196_v4 = vld [vmem:[#allocation7] sm:$0xff] }
 0x107   :  { %777 = vmatprep.mubr.f32.mxu0 %v2695_v15  ;;  %818 = vmatpush1.msra.mxu1 %v1904_v5 }
 0x108   :  { %779 = vmatmul.mubr.f32.vlgmr.msra.gmra.mxu0 %v1990_v50  ;;  %820 = vmatprep.subr.mxu1 %v2062_v61 }
 0x109   :  { %822 = vmatpush1.msra.mxu1 %v2064_v62  ;;  %867 = vmatprep.mubr.f32.mxu1 %v2695_v15 }
 0x10a   :  { %824 = vmatprep.subr.mxu1 %v2100_v52  ;;  %1031 = vmatprep.mubr.f32.mxu0 %v2695_v15 }
 0x10b   :  { %826 = vmatpush1.msra.mxu1 %v2102_v17 }
 0x10c   :  { %828 = vmatprep.subr.mxu1 %v2134_v55 }
 0x10d   :  { %830 = vmatpush1.msra.mxu1 %v2136_v46 }
 0x10e   :  { %832 = vmatprep.subr.mxu1 %v2163_v39 }
 0x10f   :  { %834 = vmatpush1.msra.mxu1 %v2165_v28 }
 0x110   :  { %869 = vmatmul.mubr.f32.vlgmr.msra.gmra.mxu1 %v1990_v50 }
 0x111   :  { %1197 = vmatprep.mubr.f32.mxu1 %v2695_v15 }
 0x1a1   :  { %v291_v2 = vpop.f32.mrf.mxu0 }
 0x1a2   :  { %v292_v33 = vadd.f32 %v291_v2, %v196_v4 }
 0x1a3   :  { %v293_v5 = vpop.f32.mrf.mxu0 }
 0x1a4   :  { %v294_v57 = vadd.f32 %v293_v5, %v197_v31 }
 0x1a9   :  { %v453_v30 = vpop.f32.mrf.mxu1 }
 0x1aa   :  { %v454_v20 = vadd.f32 %v453_v30, %v292_v33 }
 0x1ab   :  { %v455_v53 = vpop.f32.mrf.mxu1 }
 0x1ac   :  { %v456_v51 = vadd.f32 %v455_v53, %v294_v57 }
 0x1b4   :  { %v562_v32 = vpop.f32.mrf.mxu0 }
 0x1b5   :  { %v563_v61 = vadd.f32 %v562_v32, %v454_v20 }
 0x1b6   :  { %v564_v58 = vpop.f32.mrf.mxu0 }
 0x1b7   :  { %v565_v25 = vadd.f32 %v564_v58, %v456_v51 }
 0x1bd   :  { %v654_v19 = vpop.f32.mrf.mxu1 }
 0x1be   :  { %v655_v50 = vadd.f32 %v654_v19, %v563_v61 }
 0x1bf   :  { %v656_v62 = vpop.f32.mrf.mxu1 }
 0x1c0   :  { %v657_v52 = vadd.f32 %v656_v62, %v565_v25 }
 0x1c8   :  { %v780_v34 = vpop.f32.mrf.mxu0 }
 0x1c9   :  { %v781_v17 = vadd.f32 %v780_v34, %v655_v50 }
 0x1ca   :  { %v782_v26 = vpop.f32.mrf.mxu0 }
 0x1cb   :  { %v783_v46 = vadd.f32 %v782_v26, %v657_v52 }
 0x1d0   :  { %v870_v55 = vpop.f32.mrf.mxu1 }
 0x1d1   :  { %v871_v54 = vadd.f32 %v870_v55, %v781_v17 }
 0x1d2   :  { %v872_v39 = vpop.f32.mrf.mxu1 }
 0x1d3   :  { %v875_v28 = vmul.f32 0.2, %v871_v54  ;;  %v873_v40 = vadd.f32 %v872_v39, %v783_v46 }
 0x1d5   :  { %v877_v56 = vmax.f32 %v871_v54, %v875_v28  ;;  %v876_v23 = vmul.f32 0.2, %v873_v40 }
 0x1d7   :  { %v878_v18 = vmax.f32 %v873_v40, %v876_v23  ;;  %936 = vrot.lane.b32.xlu0 %v877_v56, %s1822_s25  ;;  %v2310_v63 = vand.u32 4294901760, %v877_v56 }
 0x1d9   :  { %938 = vrot.lane.b32.xlu1 %v878_v18, %s1822_s25  ;;  %v2318_v16 = vand.u32 4294901760, %v878_v18  ;;  %v2321_v43 = vsub.f32 %v877_v56, %v2310_v63 }
 0x1db   :  { %928 = vrot.lane.b32.xlu0 %v877_v56, %s1821_s4  ;;  %v2342_v10 = vsub.f32 %v878_v18, %v2318_v16  ;;  %v2685_v2 = vand.u32 4294901760, %v2321_v43 }
 0x1dd   :  { %930 = vrot.lane.b32.xlu1 %v878_v18, %s1821_s4  ;;  %v2686_v61 = vand.u32 4294901760, %v2342_v10 }
 0x1df   :  { %920 = vrot.lane.b32.xlu0 %v877_v56, %s1823_s5 }
 0x1e1   :  { %922 = vrot.lane.b32.xlu1 %v878_v18, %s1823_s5 }
 0x1e3   :  { %912 = vrot.lane.b32.xlu0 %v877_v56, %s1824_s26 }
 0x1e5   :  { %914 = vrot.lane.b32.xlu1 %v878_v18, %s1824_s26 }
 0x1e7   :  { %904 = vrot.lane.b32.xlu0 %v877_v56, %s1825_s27 }
 0x1e9   :  { %906 = vrot.lane.b32.xlu1 %v878_v18, %s1825_s27 }
 0x1eb   :  { %896 = vrot.lane.b32.xlu0 %v877_v56, %s1826_s28 }
 0x1ed   :  { %898 = vrot.lane.b32.xlu1 %v878_v18, %s1826_s28 }
 0x1ef   :  { %888 = vrot.lane.b32.xlu0 %v877_v56, %s1817_s10 }
 0x1f1   :  { %890 = vrot.lane.b32.xlu1 %v878_v18, %s1817_s10 }
 0x1f3   :  { %880 = vrot.lane.b32.xlu0 %v877_v56, %s1828_s29 }
 0x1f5   :  { %882 = vrot.lane.b32.xlu1 %v878_v18, %s1828_s29 }
 0x249   :  { %v937_v59 = vpop.permute.xlu0 %936 }
 0x24b   :  { %v939_v27 = vpop.permute.xlu1 %938 }
 0x24c   :  { %v940_v29 = vsel %vm188_vm1, %v937_v59, %v939_v27  ;;  %v941_v60 = vsel %vm188_vm1, %v939_v27, %v937_v59 }
 0x24d   :  { %v942_v45 = vmul.f32 %v940_v29, %v1920_v13  ;;  %v943_v21 = vmul.f32 %v941_v60, %v1922_v14  ;;  %v929_v24 = vpop.permute.xlu0 %928  ;;  %v879_v13 = vld [vmem:[#allocation8] sm:$0xff] }
 0x24f   :  { %v2323_v44 = vand.u32 4294901760, %v943_v21  ;;  %v2325_v41 = vand.u32 4294901760, %v942_v45  ;;  %v931_v42 = vpop.permute.xlu1 %930 }
 0x250   :  { %v932_v1 = vsel %vm176_vm0, %v929_v24, %v931_v42  ;;  %v933_v49 = vsel %vm176_vm0, %v931_v42, %v929_v24 }
 0x251   :  { %v2332_v14 = vsub.f32 %v943_v21, %v2323_v44  ;;  %v2335_v3 = vsub.f32 %v942_v45, %v2325_v41  ;;  %v934_v37 = vmul.f32 %v932_v1, %v1915_v11  ;;  %v935_v38 = vmul.f32 %v933_v49, %v1918_v12  ;;  %964 = vmatprep.subr.mxu0 %v2323_v44  ;;  %v921_v7 = vpop.permute.xlu0 %920 }
 0x252   :  { %966 = vmatpush1.msra.mxu0 %v2325_v41  ;;  %v947_v12 = vsel %vm198_vm3, %v879_v13, 0 }
 0x253   :  { %v1065_v4 = vand.u32 4294901760, %v2335_v3  ;;  %v2346_v5 = vand.u32 4294901760, %v935_v38  ;;  %v2348_v30 = vand.u32 4294901760, %v934_v37  ;;  %v923_v31 = vpop.permute.xlu1 %922  ;;  %v1059_v11 = vand.u32 4294901760, %v2332_v14 }
 0x254   :  { %v924_v32 = vsel %vm164_vm2, %v921_v7, %v923_v31  ;;  %v925_v33 = vsel %vm164_vm2, %v923_v31, %v921_v7  ;;  %v2397_v23 = vand.u32 4294901760, %v947_v12 }
 0x255   :  { %v2357_v53 = vsub.f32 %v935_v38, %v2346_v5  ;;  %v2360_v57 = vsub.f32 %v934_v37, %v2348_v30  ;;  %v926_v58 = vmul.f32 %v924_v32, %v1954_v35  ;;  %v927_v19 = vmul.f32 %v925_v33, %v1956_v36  ;;  %968 = vmatprep.subr.mxu0 %v2346_v5  ;;  %v913_v20 = vpop.permute.xlu0 %912 }
 0x256   :  { %970 = vmatpush1.msra.mxu0 %v2348_v30  ;;  %v1060_v34 = vsub.f32 %v2332_v14, %v1059_v11  ;;  %v1066_v51 = vsub.f32 %v2335_v3, %v1065_v4  ;;  %v2376_v35 = vsub.f32 %v2321_v43, %v2685_v2  ;;  %v2438_v33 = vsub.f32 %v947_v12, %v2397_v23 }
 0x257   :  { %v1077_v36 = vand.u32 4294901760, %v2360_v57  ;;  %v2379_v62 = vand.u32 4294901760, %v927_v19  ;;  %v2381_v25 = vand.u32 4294901760, %v926_v58  ;;  %v915_v50 = vpop.permute.xlu1 %914  ;;  %v1071_v26 = vand.u32 4294901760, %v2357_v53 }
 0x258   :  { %v916_v52 = vsel %vm152_vm4, %v913_v20, %v915_v50  ;;  %v917_v17 = vsel %vm152_vm4, %v915_v50, %v913_v20  ;;  %v1061_v55 = vand.u32 4294901760, %v1060_v34  ;;  %v1067_v46 = vand.u32 4294901760, %v1066_v51 }
 0x259   :  { %v2389_v54 = vsub.f32 %v927_v19, %v2379_v62  ;;  %v2392_v39 = vsub.f32 %v926_v58, %v2381_v25  ;;  %v918_v28 = vmul.f32 %v916_v52, %v1985_v47  ;;  %v919_v40 = vmul.f32 %v917_v17, %v1987_v48  ;;  %972 = vmatprep.subr.mxu0 %v2379_v62  ;;  %v905_v56 = vpop.permute.xlu0 %904 }
 0x25a   :  { %1062 = vmatprep.subr.mxu1 %v1061_v55  ;;  %974 = vmatpush1.msra.mxu0 %v2381_v25  ;;  %v1072_v18 = vsub.f32 %v2357_v53, %v1071_v26  ;;  %v1078_v59 = vsub.f32 %v2360_v57, %v1077_v36  ;;  %v2409_v47 = vsub.f32 %v2342_v10, %v2686_v61  ;;  %v2711_v55 = vld [vmem:[#allocation19_spill] sm:$0xff] }
 0x25b   :  { %v1089_v48 = vand.u32 4294901760, %v2392_v39  ;;  %v2412_v27 = vand.u32 4294901760, %v919_v40  ;;  %v2414_v29 = vand.u32 4294901760, %v918_v28  ;;  %1068 = vmatpush1.msra.mxu1 %v1067_v46  ;;  %v907_v60 = vpop.permute.xlu1 %906  ;;  %v1083_v45 = vand.u32 4294901760, %v2389_v54 }
 0x25c   :  { %v908_v21 = vsel %vm140_vm5, %v905_v56, %v907_v60  ;;  %v909_v24 = vsel %vm140_vm5, %v907_v60, %v905_v56  ;;  %v1073_v42 = vand.u32 4294901760, %v1072_v18  ;;  %v1079_v1 = vand.u32 4294901760, %v1078_v59 }
 0x25d   :  { %v2422_v49 = vsub.f32 %v919_v40, %v2412_v27  ;;  %v2425_v13 = vsub.f32 %v918_v28, %v2414_v29  ;;  %v910_v37 = vmul.f32 %v909_v24, %v2022_v8  ;;  %v911_v38 = vmul.f32 %v908_v21, %v2024_v9  ;;  %976 = vmatprep.subr.mxu0 %v2412_v27  ;;  %v897_v7 = vpop.permute.xlu0 %896  ;;  %v2712_v28 = vld [vmem:[#allocation20_spill] sm:$0xff] }
 0x25e   :  { %1074 = vmatprep.subr.mxu1 %v1073_v42  ;;  %978 = vmatpush1.msra.mxu0 %v2414_v29  ;;  %v1084_v31 = vsub.f32 %v2389_v54, %v1083_v45  ;;  %v1090_v32 = vsub.f32 %v2392_v39, %v1089_v48  ;;  %v1115_v60 = vand.u32 4294901760, %v2376_v35  ;;  %v1034_v21 = vand.u32 4294901760, %v2438_v33 }
 0x25f   :  { %v1101_v8 = vand.u32 4294901760, %v2425_v13  ;;  %v2441_v9 = vand.u32 4294901760, %v911_v38  ;;  %v2443_v58 = vand.u32 4294901760, %v910_v37  ;;  %1080 = vmatpush1.msra.mxu1 %v1079_v1  ;;  %v899_v19 = vpop.permute.xlu1 %898  ;;  %980 = vmatprep.subr.mxu0 %v2318_v16  ;;  %v1095_v20 = vand.u32 4294901760, %v2422_v49 }
 0x260   :  { %v900_v34 = vsel %vm128_vm6, %v897_v7, %v899_v19  ;;  %v901_v51 = vsel %vm128_vm6, %v899_v19, %v897_v7  ;;  %982 = vmatpush1.msra.mxu0 %v2310_v63  ;;  %v1085_v12 = vand.u32 4294901760, %v1084_v31  ;;  %v1091_v50 = vand.u32 4294901760, %v1090_v32 }
 0x261   :  { %v2453_v52 = vsub.f32 %v911_v38, %v2441_v9  ;;  %v2456_v17 = vsub.f32 %v910_v37, %v2443_v58  ;;  %v902_v46 = vmul.f32 %v901_v51, %v2711_v55  ;;  %v903_v40 = vmul.f32 %v900_v34, %v2712_v28  ;;  %v889_v56 = vpop.permute.xlu0 %888  ;;  %984 = vmatprep.subr.mxu0 %v2441_v9  ;;  %v2713_v51 = vld [vmem:[#allocation21_spill] sm:$0xff] }
 0x262   :  { %1086 = vmatprep.subr.mxu1 %v1085_v12  ;;  %986 = vmatpush1.msra.mxu0 %v2443_v58  ;;  %v1096_v18 = vsub.f32 %v2422_v49, %v1095_v20  ;;  %v1102_v59 = vsub.f32 %v2425_v13, %v1101_v8  ;;  %v1109_v28 = vand.u32 4294901760, %v2409_v47 }
 0x263   :  { %v2683_v24 = vand.u32 4294901760, %v2456_v17  ;;  %v2471_v42 = vand.u32 4294901760, %v903_v40  ;;  %v2473_v1 = vand.u32 4294901760, %v902_v46  ;;  %1092 = vmatpush1.msra.mxu1 %v1091_v50  ;;  %v891_v37 = vpop.permute.xlu1 %890  ;;  %v2684_v38 = vand.u32 4294901760, %v2453_v52  ;;  %v2714_v50 = vld [vmem:[#allocation22_spill] sm:$0xff] }
 0x264   :  { %v892_v7 = vsel %vm116_vm7, %v889_v56, %v891_v37  ;;  %v893_v31 = vsel %vm116_vm7, %v891_v37, %v889_v56  ;;  %v1097_v32 = vand.u32 4294901760, %v1096_v18  ;;  %v1103_v35 = vand.u32 4294901760, %v1102_v59 }
 0x265   :  { %v2481_v19 = vsub.f32 %v903_v40, %v2471_v42  ;;  %v2484_v34 = vsub.f32 %v902_v46, %v2473_v1  ;;  %v894_v12 = vmul.f32 %v893_v31, %v2713_v51  ;;  %v895_v55 = vmul.f32 %v892_v7, %v2714_v50  ;;  %988 = vmatprep.subr.mxu0 %v2471_v42  ;;  %v881_v7 = vpop.permute.xlu0 %880 }
 0x266   :  { %1098 = vmatprep.subr.mxu1 %v1097_v32  ;;  %990 = vmatpush1.msra.mxu0 %v2473_v1  ;;  %v1120_v56 = vsub.f32 %v2453_v52, %v2684_v38  ;;  %v1126_v46 = vsub.f32 %v2456_v17, %v2683_v24  ;;  %v1035_v40 = vsub.f32 %v2438_v33, %v1034_v21 }
 0x267   :  { %v1137_v18 = vand.u32 4294901760, %v2484_v34  ;;  %v2501_v59 = vand.u32 4294901760, %v895_v55  ;;  %v2503_v37 = vand.u32 4294901760, %v894_v12  ;;  %1104 = vmatpush1.msra.mxu1 %v1103_v35  ;;  %v883_v47 = vpop.permute.xlu1 %882  ;;  %v1131_v31 = vand.u32 4294901760, %v2481_v19 }
 0x268   :  { %v884_v32 = vsel %vm105_vm8, %v881_v7, %v883_v47  ;;  %v885_v51 = vsel %vm105_vm8, %v883_v47, %v881_v7  ;;  %1110 = vmatprep.subr.mxu1 %v1109_v28  ;;  %v1121_v50 = vand.u32 4294901760, %v1120_v56  ;;  %v1127_v24 = vand.u32 4294901760, %v1126_v46 }
 0x269   :  { %v2511_v38 = vsub.f32 %v895_v55, %v2501_v59  ;;  %v2514_v2 = vsub.f32 %v894_v12, %v2503_v37  ;;  %v886_v35 = vmul.f32 %v885_v51, %v2121_v0  ;;  %v887_v61 = vmul.f32 %v884_v32, %v2123_v22  ;;  %1116 = vmatpush1.msra.mxu1 %v1115_v60 }
 0x26a   :  { %992 = vmatprep.subr.mxu0 %v2501_v59  ;;  %1122 = vmatprep.subr.mxu1 %v1121_v50  ;;  %v1132_v6 = vsub.f32 %v2481_v19, %v1131_v31  ;;  %v1138_v55 = vsub.f32 %v2484_v34, %v1137_v18  ;;  %v1036_v46 = vand.u32 4294901760, %v1035_v40 }
 0x26b   :  { %v1149_v28 = vand.u32 4294901760, %v2514_v2  ;;  %v2526_v12 = vand.u32 4294901760, %v887_v61  ;;  %v2528_v56 = vand.u32 4294901760, %v886_v35  ;;  %994 = vmatpush1.msra.mxu0 %v2503_v37  ;;  %1128 = vmatpush1.msra.mxu1 %v1127_v24  ;;  %v1143_v0 = vand.u32 4294901760, %v2511_v38 }
 0x26c   :  { %v1133_v22 = vand.u32 4294901760, %v1132_v6  ;;  %v1139_v60 = vand.u32 4294901760, %v1138_v55 }
 0x26d   :  { %v2533_v7 = vsub.f32 %v887_v61, %v2526_v12  ;;  %v2536_v47 = vsub.f32 %v886_v35, %v2528_v56  ;;  %996 = vmatprep.subr.mxu0 %v2526_v12  ;;  %v1144_v32 = vsub.f32 %v2511_v38, %v1143_v0  ;;  %v1150_v24 = vsub.f32 %v2514_v2, %v1149_v28 }
 0x26e   :  { %1134 = vmatprep.subr.mxu1 %v1133_v22  ;;  %998 = vmatpush1.msra.mxu0 %v2528_v56 }
 0x26f   :  { %v1161_v40 = vand.u32 4294901760, %v2536_v47  ;;  %1140 = vmatpush1.msra.mxu1 %v1139_v60  ;;  %1221 = vmatprep.subr.mxu0 %v2332_v14  ;;  %v1145_v61 = vand.u32 4294901760, %v1144_v32  ;;  %v1151_v51 = vand.u32 4294901760, %v1150_v24  ;;  %v1155_v50 = vand.u32 4294901760, %v2533_v7 }
 0x270   :  { %1037 = vmatmul.mubr.f32.vlgmr.msra.gmra.mxu0 %v1036_v46  ;;  %v2715_v14 = vand.u32 4294901760, %v2342_v10 }
 0x271   :  { %1224 = vmatpush1.msra.mxu0 %v2335_v3  ;;  %1146 = vmatprep.subr.mxu1 %v1145_v61  ;;  %v1156_v35 = vsub.f32 %v2533_v7, %v1155_v50  ;;  %v1162_v6 = vsub.f32 %v2536_v47, %v1161_v40  ;;  %v2716_v3 = vand.u32 4294901760, %v2321_v43 }
 0x272   :  { %1227 = vmatprep.subr.mxu0 %v2357_v53  ;;  %1152 = vmatpush1.msra.mxu1 %v1151_v51 }
 0x273   :  { %1230 = vmatpush1.msra.mxu0 %v2360_v57  ;;  %v1157_v55 = vand.u32 4294901760, %v1156_v35  ;;  %v1163_v22 = vand.u32 4294901760, %v1162_v6  ;;  %1305 = vmatprep.mubr.f32.mxu0 %v2695_v15 }
 0x274   :  { %1233 = vmatprep.subr.mxu0 %v2389_v54 }
 0x275   :  { %1236 = vmatpush1.msra.mxu0 %v2392_v39  ;;  %1158 = vmatprep.subr.mxu1 %v1157_v55 }
 0x276   :  { %1239 = vmatprep.subr.mxu0 %v2422_v49  ;;  %1164 = vmatpush1.msra.mxu1 %v1163_v22 }
 0x277   :  { %1242 = vmatpush1.msra.mxu0 %v2425_v13  ;;  %1199 = vmatmul.mubr.f32.vlgmr.msra.gmra.mxu1 %v2397_v23 }
 0x278   :  { %1245 = vmatprep.subr.mxu0 %v2342_v10  ;;  %1329 = vmatprep.subr.mxu1 %v2323_v44 }
 0x279   :  { %1248 = vmatpush1.msra.mxu0 %v2321_v43  ;;  %1331 = vmatpush1.msra.mxu1 %v2325_v41 }
 0x27a   :  { %1251 = vmatprep.subr.mxu0 %v2453_v52  ;;  %1333 = vmatprep.subr.mxu1 %v2346_v5 }
 0x27b   :  { %1254 = vmatpush1.msra.mxu0 %v2456_v17  ;;  %1335 = vmatpush1.msra.mxu1 %v2348_v30 }
 0x27c   :  { %1257 = vmatprep.subr.mxu0 %v2481_v19  ;;  %1337 = vmatprep.subr.mxu1 %v2379_v62 }
 0x27d   :  { %1260 = vmatpush1.msra.mxu0 %v2484_v34  ;;  %1339 = vmatpush1.msra.mxu1 %v2381_v25 }
 0x27e   :  { %1263 = vmatprep.subr.mxu0 %v2511_v38  ;;  %1341 = vmatprep.subr.mxu1 %v2412_v27 }
 0x27f   :  { %1266 = vmatpush1.msra.mxu0 %v2514_v2  ;;  %1343 = vmatpush1.msra.mxu1 %v2414_v29 }
 0x280   :  { %1269 = vmatprep.subr.mxu0 %v2533_v7  ;;  %1345 = vmatprep.subr.mxu1 %v2318_v16 }
 0x281   :  { %1272 = vmatpush1.msra.mxu0 %v2536_v47  ;;  %1347 = vmatpush1.msra.mxu1 %v2310_v63 }
 0x282   :  { %1308 = vmatmul.mubr.f32.vlgmr.msra.gmra.mxu0 %v2438_v33  ;;  %1349 = vmatprep.subr.mxu1 %v2441_v9  ;;  %v1661_v33 = vld [vmem:[#allocation11] sm:$0xff] }
 0x283   :  { %1423 = vmatprep.subr.mxu0 %v1059_v11  ;;  %1351 = vmatpush1.msra.mxu1 %v2443_v58  ;;  %v2718_v11 = vand.u32 4294901760, %v2456_v17 }
 0x284   :  { %1427 = vmatpush1.msra.mxu0 %v1065_v4  ;;  %1353 = vmatprep.subr.mxu1 %v2471_v42  ;;  %v2717_v4 = vand.u32 4294901760, %v2453_v52 }
 0x285   :  { %1431 = vmatprep.subr.mxu0 %v1071_v26  ;;  %1355 = vmatpush1.msra.mxu1 %v2473_v1 }
 0x286   :  { %1435 = vmatpush1.msra.mxu0 %v1077_v36  ;;  %1357 = vmatprep.subr.mxu1 %v2501_v59 }
 0x287   :  { %1439 = vmatprep.subr.mxu0 %v1083_v45  ;;  %1359 = vmatpush1.msra.mxu1 %v2503_v37 }
 0x288   :  { %1443 = vmatpush1.msra.mxu0 %v1089_v48  ;;  %1361 = vmatprep.subr.mxu1 %v2526_v12 }
 0x289   :  { %1447 = vmatprep.subr.mxu0 %v1095_v20  ;;  %1363 = vmatpush1.msra.mxu1 %v2528_v56 }
 0x28a   :  { %1396 = vmatprep.mubr.f32.mxu1 %v2695_v15  ;;  %1451 = vmatpush1.msra.mxu0 %v1101_v8 }
 0x28b   :  { %1400 = vmatmul.mubr.f32.vlgmr.msra.gmra.mxu1 %v1034_v21  ;;  %1455 = vmatprep.subr.mxu0 %v2715_v14 }
 0x28c   :  { %1547 = vmatprep.subr.mxu1 %v2323_v44  ;;  %1459 = vmatpush1.msra.mxu0 %v2716_v3 }
 0x28d   :  { %1549 = vmatpush1.msra.mxu1 %v2325_v41  ;;  %1463 = vmatprep.subr.mxu0 %v2717_v4  ;;  %v945_v41 = vld [vmem:[#allocation10 + $0x8] sm:$0xff] }
 0x28e   :  { %1551 = vmatprep.subr.mxu1 %v2346_v5  ;;  %1467 = vmatpush1.msra.mxu0 %v2718_v11 }
 0x28f   :  { %1553 = vmatpush1.msra.mxu1 %v2348_v30  ;;  %1471 = vmatprep.subr.mxu0 %v1131_v31 }
 0x290   :  { %1555 = vmatprep.subr.mxu1 %v2379_v62  ;;  %1475 = vmatpush1.msra.mxu0 %v1137_v18 }
 0x291   :  { %1557 = vmatpush1.msra.mxu1 %v2381_v25  ;;  %1479 = vmatprep.subr.mxu0 %v1143_v0 }
 0x292   :  { %1559 = vmatprep.subr.mxu1 %v2412_v27  ;;  %1483 = vmatpush1.msra.mxu0 %v1149_v28 }
 0x293   :  { %1561 = vmatpush1.msra.mxu1 %v2414_v29  ;;  %1487 = vmatprep.subr.mxu0 %v1155_v50 }
 0x294   :  { %1563 = vmatprep.subr.mxu1 %v2318_v16  ;;  %1491 = vmatpush1.msra.mxu0 %v1161_v40  ;;  %v944_v16 = vld [vmem:[#allocation10] sm:$0xff] }
 0x295   :  { %1524 = vmatprep.mubr.f32.mxu0 %v2695_v15  ;;  %1565 = vmatpush1.msra.mxu1 %v2310_v63 }
 0x296   :  { %1526 = vmatmul.mubr.f32.vlgmr.msra.gmra.mxu0 %v2397_v23  ;;  %1567 = vmatprep.subr.mxu1 %v2441_v9 }
 0x297   :  { %1569 = vmatpush1.msra.mxu1 %v2443_v58  ;;  %1614 = vmatprep.mubr.f32.mxu1 %v2695_v15  ;;  %v1662_v58 = vld [vmem:[#allocation11 + $0x8] sm:$0xff] }
 0x298   :  { %1571 = vmatprep.subr.mxu1 %v2471_v42 }
 0x299   :  { %1573 = vmatpush1.msra.mxu1 %v2473_v1 }
 0x29a   :  { %1575 = vmatprep.subr.mxu1 %v2501_v59 }
 0x29b   :  { %1577 = vmatpush1.msra.mxu1 %v2503_v37 }
 0x29c   :  { %1579 = vmatprep.subr.mxu1 %v2526_v12 }
 0x29d   :  { %1581 = vmatpush1.msra.mxu1 %v2528_v56 }
 0x29e   :  { %1616 = vmatmul.mubr.f32.vlgmr.msra.gmra.mxu1 %v2397_v23 }
 0x330   :  { %v1038_v63 = vpop.f32.mrf.mxu0 }
 0x331   :  { %v1039_v10 = vadd.f32 %v1038_v63, %v944_v16 }
 0x332   :  { %v1040_v43 = vpop.f32.mrf.mxu0 }
 0x333   :  { %v1041_v5 = vadd.f32 %v1040_v43, %v945_v41 }
 0x337   :  { %v1200_v44 = vpop.f32.mrf.mxu1 }
 0x338   :  { %v1201_v57 = vadd.f32 %v1200_v44, %v1039_v10 }
 0x339   :  { %v1202_v2 = vpop.f32.mrf.mxu1 }
 0x33a   :  { %v1203_v62 = vadd.f32 %v1202_v2, %v1041_v5 }
 0x342   :  { %v1309_v15 = vpop.f32.mrf.mxu0 }
 0x343   :  { %v1310_v25 = vadd.f32 %v1309_v15, %v1201_v57 }
 0x344   :  { %v1311_v30 = vpop.f32.mrf.mxu0 }
 0x345   :  { %v1312_v54 = vadd.f32 %v1311_v30, %v1203_v62 }
 0x34b   :  { %v1401_v53 = vpop.f32.mrf.mxu1 }
 0x34c   :  { %v1402_v39 = vadd.f32 %v1401_v53, %v1310_v25 }
 0x34d   :  { %v1403_v26 = vpop.f32.mrf.mxu1 }
 0x34e   :  { %v1404_v23 = vadd.f32 %v1403_v26, %v1312_v54 }
 0x356   :  { %v1527_v36 = vpop.f32.mrf.mxu0 }
 0x357   :  { %v1528_v27 = vadd.f32 %v1527_v36, %v1402_v39 }
 0x358   :  { %v1529_v48 = vpop.f32.mrf.mxu0 }
 0x359   :  { %v1530_v45 = vadd.f32 %v1529_v48, %v1404_v23 }
 0x35e   :  { %v1617_v29 = vpop.f32.mrf.mxu1 }
 0x35f   :  { %v1618_v49 = vadd.f32 %v1617_v29, %v1528_v27 }
 0x360   :  { %v1619_v13 = vpop.f32.mrf.mxu1 }
 0x361   :  { %v1622_v8 = vadd.f32 %v1661_v33, %v1618_v49  ;;  %v1620_v9 = vadd.f32 %v1619_v13, %v1530_v45 }
 0x363   :  { %1624 = vst [vmem:[#allocation13] sm:$0xff] %v1622_v8  ;;  %v1623_v20 = vadd.f32 %v1662_v58, %v1620_v9 }
 0x365   :  { %1625 = vst [vmem:[#allocation13 + $0x8] sm:$0xff] %v1623_v20 }
 0x366   :  { %1794 = shalt.err (!%p1791_p6)
}
 0x367   :  { %1635 = dma.vmem_to_hbm [thread:$0]  %s1633_s7, 256, %s2663_s6, [#allocation4]  }
 0x368   :  { %1811 = dma.done.wait [#allocation4], 256  }
 0x369   :  { %1812 = vsyncadd [#allocation4], 4294967040 }
 0x36a   :  { %1639 = vsyncpa [#allocation3], 1 }
 0x36b   :  { %1640 = vsyncpa [#allocation6], 1 }
 0x36c   :  { %1641 = vsyncpa [#allocation9], 1 }
 0x36d   :  { %1642 = vsyncpa [#allocation12], 1 }
 0x36e   :  { %1643 = vsyncpa [#allocation4], 1 }

</bundles_post_ra>
